<compile_context>
chip_gen: v7x
topology: tpu7x:2x2x1
jax: 0.10.0
libtpu: 0.0.40
codegen_flags: <defaults>
</compile_context>

<pallas_src>
import jax
import jax.numpy as jnp
from jax.experimental import pallas as pl
from jax.experimental.pallas import tpu as pltpu


def token_embedding_kernel(x_ref, w_ref, b_ref, o_ref):
    # x_ref: (tm, C) row tile of flattened (B*L, C) activations.
    # w_ref: (C, D) VMEM-resident weight (pre-transposed -> D on the lane axis).
    # b_ref: (1, D) VMEM-resident bias row.
    acc = jnp.dot(x_ref[...], w_ref[...], preferred_element_type=jnp.float32)
    # Epilogue: bias add. Fuse any downstream elementwise embedding work here.
    # TODO(synk): fuse positional/temporal embedding add + dropout mask of the
    # surrounding DataEmbedding here if/when this kernel is used in that stack.
    o_ref[...] = (acc + b_ref[...]).astype(o_ref.dtype)


def prepare_token_embedding_params(conv_weight, conv_bias):
    """One-time parameter prep (do this at init, not per forward call).

    conv_weight: (D, C, 1) raw Conv1d weight or (D, C) squeezed.
    conv_bias:   (D,)
    Returns (W_cd: (C, D), bias_row: (1, D)).
    """
    w = jnp.asarray(conv_weight)
    if w.ndim == 3:          # (D, C, 1) straight from nn.Conv1d
        w = w[..., 0]
    d_model = w.shape[0]
    return w.T, jnp.asarray(conv_bias).reshape(1, d_model)


def token_embedding(x, w_cd, bias_row, *, block_rows=2048,
                    vmem_budget_bytes=24 << 20):
    """x: (B, L, C); w_cd: (C, D) pre-transposed weight; bias_row: (1, D)."""
    B, L, C = x.shape
    D = w_cd.shape[1]
    M = B * L

    in_bytes = jnp.dtype(x.dtype).itemsize
    out_bytes = in_bytes                      # output emitted in input dtype
    w_bytes = jnp.dtype(w_cd.dtype).itemsize

    # Per-step VMEM ~= double-buffered x tile + double-buffered out tile
    #                  + resident weight + resident bias.
    fixed_bytes = C * D * w_bytes + D * out_bytes
    per_row_bytes = 2 * (C * in_bytes + D * out_bytes)
    tm_cap = max(8, (vmem_budget_bytes - fixed_bytes) // per_row_bytes)

    tm = min(block_rows, tm_cap, M)
    tm = max(8, (tm // 8) * 8)                # sublane-aligned row tile

    # Prefer >= 2 grid steps when M allows, so both v7x TensorCores get work.
    if pl.cdiv(M, tm) == 1 and M >= 16:
        tm = max(8, (pl.cdiv(M, 2) // 8) * 8)

    grid_m = pl.cdiv(M, tm)

    # Explicit scoped-VMEM limit only when the tile actually needs headroom
    # beyond the conservative v5e default (16 MiB); capped well under v7x's
    # 64 MiB physical VMEM.
    needed_bytes = fixed_bytes + per_row_bytes * tm
    vmem_limit = int(min(max(needed_bytes * 5 // 4 + (1 << 20), 16 << 20),
                         48 << 20))

    xm = x.reshape(M, C)                       # no padding pass

    out = pl.pallas_call(
        token_embedding_kernel,
        out_shape=jax.ShapeDtypeStruct((M, D), x.dtype),   # no slice pass
        grid=(grid_m,),
        in_specs=[
            pl.BlockSpec((tm, C), lambda i: (i, 0)),   # activation row tile
            pl.BlockSpec((C, D), lambda i: (0, 0)),    # weight, VMEM-resident
            pl.BlockSpec((1, D), lambda i: (0, 0)),    # bias row, VMEM-resident
        ],
        out_specs=pl.BlockSpec((tm, D), lambda i: (i, 0)),  # lane-dense: D on lanes
        compiler_params=pltpu.CompilerParams(
            dimension_semantics=("parallel",),
            vmem_limit_bytes=vmem_limit,
        ),
    )(xm, w_cd, bias_row)

    return out.reshape(B, L, D)


def reference(x, weight_dc, bias):
    """Pure-JAX reference mirroring the PyTorch forward (k=1 conv == matmul)."""
    return jnp.einsum("blc,dc->bld", x, weight_dc,
                      precision=jax.lax.Precision.HIGHEST) + bias


if __name__ == "__main__":
    # Module config: c_in = 8, d_model = 128 (lane-dense), seq len L = 16, batch = 2.
    B, L, C, D = 2, 16, 8, 128

    key = jax.random.PRNGKey(0)
    kx, kw, kb = jax.random.split(key, 3)
    x = jax.random.normal(kx, (B, L, C), jnp.float32)
    # Conv1d(c_in, d_model, k=1).weight has shape (D, C, 1).
    weight = jax.random.normal(kw, (D, C, 1), jnp.float32) * 0.1
    bias = jax.random.normal(kb, (D,), jnp.float32) * 0.1

    # One-time parameter prep (equivalent to doing it at module init).
    w_cd, bias_row = prepare_token_embedding_params(weight, bias)

    out = jax.block_until_ready(token_embedding(x, w_cd, bias_row))
    ref = reference(x, weight[..., 0], bias)

    assert out.shape == (B, L, D)
    assert jnp.allclose(out, ref, atol=1e-4, rtol=1e-4), float(jnp.max(jnp.abs(out - ref)))
    print("KERNEL_OK")
</pallas_src>

<mosaic_0001>
module attributes {stable_mosaic.version = 11 : i64} {
  func.func @token_embedding_kernel(%arg0: i32, %arg1: memref<16x8xf32, #tpu.memory_space<vmem>>, %arg2: memref<8x128xf32, #tpu.memory_space<vmem>>, %arg3: memref<1x128xf32, #tpu.memory_space<vmem>>, %arg4: memref<16x128xf32, #tpu.memory_space<vmem>>) attributes {dimension_semantics = [#tpu.dimension_semantics<parallel>], iteration_bounds = array<i64: 2>, scalar_prefetch = 0 : i64, scratch_operands = 0 : i64, tpu.core_type = #tpu.core_type<tc>, window_params = [{transform_indices = @transform_0, window_bounds = array<i64: 16, 8>}, {pipeline_mode = #tpu.pipeline_mode<synchronous>, transform_indices = @transform_1, window_bounds = array<i64: 8, 128>}, {pipeline_mode = #tpu.pipeline_mode<synchronous>, transform_indices = @transform_2, window_bounds = array<i64: 1, 128>}, {transform_indices = @transform_3, window_bounds = array<i64: 16, 128>}]} {
    %c0 = arith.constant 0 : index
    %c0_0 = arith.constant 0 : index
    %0 = vector.load %arg1[%c0, %c0_0] : memref<16x8xf32, #tpu.memory_space<vmem>>, vector<16x8xf32>
    %c0_1 = arith.constant 0 : index
    %c0_2 = arith.constant 0 : index
    %1 = vector.load %arg2[%c0_1, %c0_2] : memref<8x128xf32, #tpu.memory_space<vmem>>, vector<8x128xf32>
    %cst = arith.constant dense<0.000000e+00> : vector<16x128xf32>
    %2 = tpu.matmul %0, %1, %cst {dimension_numbers = #tpu.dot_dimension_numbers<[1], [0], [0], [1], [0, 0, 1, 1], [], []>} : vector<16x8xf32>, vector<8x128xf32>, vector<16x128xf32> -> vector<16x128xf32>
    %c0_3 = arith.constant 0 : index
    %c0_4 = arith.constant 0 : index
    %3 = vector.load %arg3[%c0_3, %c0_4] : memref<1x128xf32, #tpu.memory_space<vmem>>, vector<1x128xf32>
    %4 = vector.broadcast %3 : vector<1x128xf32> to vector<16x128xf32>
    %5 = arith.addf %2, %4 : vector<16x128xf32>
    %c0_5 = arith.constant 0 : index
    %c0_6 = arith.constant 0 : index
    %6 = vector.load %arg4[%c0_5, %c0_6] : memref<16x128xf32, #tpu.memory_space<vmem>>, vector<16x128xf32>
    tpu.vector_store %arg4[%c0_5, %c0_6], %5 {strides = array<i32>} : memref<16x128xf32, #tpu.memory_space<vmem>>, vector<16x128xf32>,
    return
  }
  func.func @transform_0(%arg0: i32) -> (i32, i32) {
    %c0_i32 = arith.constant 0 : i32
    %c0_i32_0 = arith.constant 0 : i32
    return %arg0, %c0_i32 : i32, i32
  }
  func.func @transform_1(%arg0: i32) -> (i32, i32) {
    %c0_i32 = arith.constant 0 : i32
    %c0_i32_0 = arith.constant 0 : i32
    %c0_i32_1 = arith.constant 0 : i32
    return %c0_i32, %c0_i32_0 : i32, i32
  }
  func.func @transform_2(%arg0: i32) -> (i32, i32) {
    %c0_i32 = arith.constant 0 : i32
    %c0_i32_0 = arith.constant 0 : i32
    %c0_i32_1 = arith.constant 0 : i32
    return %c0_i32, %c0_i32_0 : i32, i32
  }
  func.func @transform_3(%arg0: i32) -> (i32, i32) {
    %c0_i32 = arith.constant 0 : i32
    %c0_i32_0 = arith.constant 0 : i32
    return %arg0, %c0_i32 : i32, i32
  }
}

</mosaic_0001>

<bundles_post_ra>
// kernel: tpu_custom_call.1
= control target key start
LH: loop header
LB: loop body
LE: loop exit
PB: predicated region body
PF: predicated region fallthrough
CT: control target
= control target key end

     0   :  { %8 = vsyncpa [#allocation3], 0  ;;  %s602_s0 = inlined_call_operand.vmem [shape: f32[32,8], index: 0, kind: input, shape index: {}]   ;;  %s603_s1 = inlined_call_operand.vmem [shape: f32[8,128], index: 1, kind: input, shape index: {}]   ;;  %s604_s2 = inlined_call_operand.vmem [shape: f32[1,128], index: 2, kind: input, shape index: {}]   ;;  %s605_s3 = inlined_call_operand.hbm [shape: f32[32,128], index: 3, kind: output, shape index: {}]  }
   0x1   :  { %10 = vsyncpa [#allocation3 + $0x1], 0  ;;  %s494_s12 = smov 0   ;;  %s496_s13 = smov 0  }
   0x2   :  { %s498_s14 = smov 0   ;;  %s500_s15 = smov 0  }
   0x3 LB: > { %s515_s16 = sadd.s32 4294967295, %s469_s15   ;;  %s342_s17 = sadd.s32 4294967294, %s469_s15   ;;  %s469_s15 = sphi %s500_s15, %s611_s15   ;;  %s465_s14 = sphi %s498_s14, %s610_s14   ;;  %s461_s13 = sphi %s496_s13, %s609_s13   ;;  %s457_s12 = sphi %s494_s12, %s608_s12  }
   0x4   : > { %s519_s18 = sadd.s32 1, %s469_s15   ;;  %s91_s19 = sadd.s32 1, %s465_s14 }
   0x5   : > { %s88_s20 = ssub.s32 %s469_s15, %s519_s18  ;;  %p101_p0 = scmp.ne.s32.totalorder %s465_s14, %s461_s13 }
   0x6   : > { %p89_p1 = scmp.eq.s32.totalorder %s88_s20, 0  ;;  %p102_p2 = scmp.eq.s32.totalorder %s515_s16, 1 }
   0x7   : > { %p107_p3 = scmp.ne.s32.totalorder %s461_s13, %s457_s12  ;;  %p108_p4 = scmp.eq.s32.totalorder %s342_s17, 1 }
   0x8   : > { %s530_s21 = scalar_select %p89_p1, %s465_s14, %s91_s19  }
   0x9   : > { %p532_p5 = por %p102_p2, %p101_p0  ;;  %p536_p6 = por %p108_p4, %p107_p3 }
   0xa   : > { %p345_p7 = scmp.ge.s32.totalorder %s469_s15, 1  ;;  %p141_p8 = scmp.lt.s32.totalorder %s469_s15, 3 }
   0xc   : > { %p142_p9 = pnand %p345_p7, %p141_p8 }
   0xd   : > { %v174_v0 = vld [vmem:[%s603_s1] sm:$0xff] (!%p142_p9)  ;;  %s347_s26 = sshll.u32 (!%p142_p9), %s515_s16, 1  ;;  %vm182_vm0 = vcmask (!%p142_p9), 64512   ;;  %s162_s4 = sand.u32 (!%p142_p9), 1, %s461_s13  }
   0xe   : > { %145 = sbr.rel (%p142_p9) target bundleno = 256 (0x100), region = 32  ;;  %361 = vmatprep.subr.mxu0 (!%p142_p9), %v174_v0  ;;  %p166_p10 = scmp.lt.s32.totalorder (!%p142_p9), %s347_s26, 3  ;;  %v349_v3 = vld [vmem:[%s604_s2] ss:$0 sm:$0xff] (!%p142_p9) }
   0xf   : > { %362 = vmatpush3.msra.mxu0 (!%p142_p9), %v174_v0  ;;  %s346_s5 = sshll.u32 (!%p142_p9), %s162_s4, 4  ;;  %s357_s10 = sshll.u32 (!%p142_p9), %s515_s16, 8 }
  0x10   : > { %s164_s8 = scalar_lea.vmem (!%p142_p9), [#allocation2], %s346_s5  ;;  %s559_s19 = scalar_lea.hbm (!%p142_p9), %s605_s3, %s357_s10 }
  0x11   : > { %s280_s9 = sshll.u32 (!%p142_p9), %s164_s8, 4  ;;  %s561_s20 = scalar_lea.sflag (!%p142_p9), [#allocation3], %s162_s4  ;;  %s554_s9 = int_to_ptr.vmem [resolvable:$true] %s280_s9 }
  0x12   : > { %s407_s24 = scalar_lea.vmem (!%p142_p9), %s554_s9, 256  ;;  %s471_s16 = smov (!%p142_p9), [#allocation2]  }
  0x13   : > { %p408_p11 = scmp.ne.s32.totalorder (!%p142_p9), %s554_s9, %s407_s24  ;;  %s411_s25 = sshll.u32 (!%p142_p9), %s471_s16, 4  ;;  %s412_s25 = int_to_ptr.vmem [resolvable:$false] %s411_s25 }
  0x14   : > { %p414_p0 = scmp.lt.s32.totalorder (!%p142_p9), %s554_s9, %s412_s25 }
  0x15   : > { %s613_s26 = smov (!%p166_p10, %s347_s26), 3  ;;  %p409_p12 = pnand %p408_p11, %p532_p5 }
  0x16   : > { %s348_s27 = sshll.u32 %s613_s26, 3  ;;  %s413_s26 = scalar_lea.vmem %s412_s25, 512 }
  0x17   : > { %s169_s30 = scalar_lea.vmem %s602_s0, %s348_s27  ;;  %p410_p13 = pneg %p409_p12 }
  0x18   : > { %v172_v1 = vld [vmem:[%s169_s30] sm:$0xff]  ;;  %v173_v2 = vld [vmem:[%s169_s30 + $0x8] sm:$0xff]  ;;  %p415_p1 = scmp.lt.s32.totalorder %s413_s26, %s407_s24 }
  0x19   : > { %363 = vmatprep.mubr.msk.f32.mxu0 %vm182_vm0, %v172_v1 }
  0x1a   : > { %364 = vmatmul.mubr.msk.f32.vlgmr.msra.gmra.mrb[0].mxu0 %vm182_vm0, %v173_v2  ;;  %p416_p2 = por %p415_p1, %p414_p0 }
  0x1c   : > { %p417_p3 = pnand %p416_p2, %p410_p13 }
  0xed   : > { %v365_v4 = vpop.f32.mrb[0].mxu0 }
  0xee   : > { %v261_v5 = vadd.f32 %v365_v4, %v349_v3  ;;  %v255_v6 = vpop.f32.mrb[1].mxu0 }
  0xef   : > { %v256_v7 = vadd.f32 %v349_v3, %v255_v6 }
  0xf0   : > { %265 = vst [vmem:[%s164_s8 + $0x8] sm:$0xff] %v261_v5 }
  0xf1   : > { %264 = vst [vmem:[%s164_s8] sm:$0xff] %v256_v7 }
  0xf2   : > { %420 = shalt.err (!%p417_p3)
}
  0xf3   : > { %s421_s27 = scalar_lea.hbm %s559_s19, 256  ;;  %s425_s30 = scalar_lea.hbm %s605_s3, 512 }
  0xf4   : > { %p422_p4 = scmp.ne.s32.totalorder %s559_s19, %s421_s27  ;;  %p426_p9 = scmp.lt.u32.totalorder %s559_s19, %s605_s3 }
  0xf5   : > { %p427_p10 = scmp.lt.u32.totalorder %s425_s30, %s421_s27  ;;  %p429_p12 = scmp.lt.u32.totalorder %s421_s27, %s559_s19 }
  0xf6   : > { %p423_p7 = pnand %p422_p4, %p532_p5 }
  0xf7   : > { %p428_p11 = por %p427_p10, %p426_p9 }
  0xf8   : > { %p424_p8 = pneg %p423_p7 }
  0xf9   : > { %p430_p13 = por %p429_p12, %p428_p11 }
  0xfb   : > { %p431_p0 = pnand %p430_p13, %p424_p8 }
  0xfd   : > { %434 = shalt.err (!%p431_p0)
}
  0xfe   : > { %s472_s6 = smov 128   ;;  %s473_s7 = smov 8  }
  0xff   : > { %366 = dma.vmem_to_hbm [thread:$0]  (%p532_p5), %s554_s9, 256, %s559_s19, %s561_s20, %s472_s6, %s472_s6, %s473_s7  }
 0x100 PF: > { %p372_p1 = scmp.ge.s32.totalorder %s469_s15, 2  ;;  %s295_s8 = sand.u32 1, %s457_s12  }
 0x101   : > { %s296_s10 = scalar_lea.sflag [#allocation3], %s295_s8 }
 0x102   : > { %p369_p2 = pnand %p372_p1, %p536_p6 }
 0x104   : > { %452 = dma.done.wait (!%p369_p2), %s296_s10, 256  }
 0x105   : > { %454 = vsyncadd (!%p369_p2), %s296_s10, 4294967040  ;;  %p13_p3 = scmp.ge.s32.totalorder %s519_s18, 4   ;;  %s608_s12 = smov %s461_s13 }
 0x106   : > { %s609_s13 = smov %s465_s14  ;;  %s610_s14 = smov %s530_s21 }
 0x107   : > { %s611_s15 = smov %s519_s18  ;;  %15 = sbr.rel (!%p13_p3) target bundleno = 3 (0x3), region = 67 }
 0x10e   :  { %301 = vsyncpa [#allocation3], 1 }
 0x10f   :  { %303 = vsyncpa [#allocation3 + $0x1], 1 }

</bundles_post_ra>
